<compile_context>
chip_gen: v7x
topology: tpu7x:2x2x1
jax: 0.10.0
libtpu: 0.0.40
codegen_flags: <defaults>
</compile_context>

<pallas_src>
import jax
import jax.numpy as jnp
from jax.experimental import pallas as pl
from jax.experimental.pallas import tpu as pltpu


_LANE = 128
_LANE_WIDTH = 8 * _LANE          # 1024: lane-dense last dim (full vreg rows)
_SUBLANE_ALIGN = 32              # covers f32 (8), bf16 (16), int8/fp8 (32) packing


def _round_up(x, m):
    return ((x + m - 1) // m) * m


def _vmem_budget():
    """Generation-aware (block_bytes, vmem_limit_bytes).

    v5e/v6e: 128 MiB VMEM per TensorCore -> 16 MiB blocks, 80 MiB scoped limit
    (in + out double-buffered = 4x block = 64 MiB).  v7x: only 64 MiB per TC ->
    8 MiB blocks, 48 MiB limit.  Falls back to the conservative v7x numbers if
    the hardware query is unavailable.
    """
    cap = None
    try:
        cap = getattr(pltpu.get_tpu_info(), "vmem_capacity_bytes", None)
    except Exception:
        cap = None
    if cap is not None and cap >= 100 * 1024 * 1024:
        return 16 * 1024 * 1024, 80 * 1024 * 1024
    return 8 * 1024 * 1024, 48 * 1024 * 1024


def _make_lambda_kernel(fn):
    """Build a Pallas kernel that applies `fn` elementwise to its tile."""
    def kernel(x_ref, o_ref):
        o_ref[...] = fn(x_ref[...]).astype(o_ref.dtype)
    return kernel


def _pallas_elementwise(fn, x, out_dtype):
    """Apply elementwise `fn` via a tiled, lane-dense Pallas kernel."""
    orig_shape = x.shape
    total = x.size
    flat = x.reshape(-1)   # contiguous flatten: metadata only under jit

    # Pick a lane-dense last dim that divides the element count exactly so the
    # common case needs NO pad and NO output slice (each is a full extra HBM
    # round trip on a purely bandwidth-bound op).
    if total >= _LANE_WIDTH and total % _LANE_WIDTH == 0:
        lane_w, needs_pad = _LANE_WIDTH, False
    elif total >= _LANE and total % _LANE == 0:
        lane_w, needs_pad = _LANE, False
    else:
        lane_w = _LANE_WIDTH if total >= _LANE_WIDTH else _round_up(total, _LANE)
        needs_pad = True

    rows = -(-total // lane_w)           # ceil division
    padded_total = rows * lane_w
    if needs_pad:
        # TODO(synk): truly ragged element counts still pay one pad + one slice
        # (full-tensor HBM copies); pad with 1.0 so fns singular at 0 (log,
        # 1/x, rsqrt) do not emit NaN/Inf in the (discarded) pad region.
        flat = jnp.pad(flat, (0, padded_total - total), constant_values=1)
    slab = flat.reshape(rows, lane_w)

    # Block sizing: biggest block that double-buffers comfortably in VMEM on
    # this TPU generation; rows rounded to 32 sublanes so every dtype packs
    # full vregs and stores stay unmasked (only the single partial last block,
    # when rows % block_rows != 0, is masked by Pallas).
    block_bytes, vmem_limit = _vmem_budget()
    itemsize = max(jnp.dtype(x.dtype).itemsize, jnp.dtype(out_dtype).itemsize)
    block_rows_cap = _round_up(max(1, block_bytes // (lane_w * itemsize)),
                               _SUBLANE_ALIGN)
    block_rows = rows if rows <= block_rows_cap else block_rows_cap
    grid = (pl.cdiv(rows, block_rows),)

    out_slab = pl.pallas_call(
        _make_lambda_kernel(fn),
        out_shape=jax.ShapeDtypeStruct((rows, lane_w), out_dtype),
        grid=grid,
        in_specs=[pl.BlockSpec((block_rows, lane_w), lambda i: (i, 0))],
        out_specs=pl.BlockSpec((block_rows, lane_w), lambda i: (i, 0)),
        compiler_params=pltpu.CompilerParams(
            # "parallel" lets the runtime shard the 1-D grid across both
            # TensorCores on megacore / v7x parts.
            dimension_semantics=("parallel",),
            vmem_limit_bytes=vmem_limit,
        ),
    )(slab)

    out_flat = out_slab.reshape(-1)
    if needs_pad:
        out_flat = out_flat[:total]
    return out_flat.reshape(orig_shape)


class Lambda:
    """JAX/Pallas mirror of the PyTorch Lambda module: forward(x) = fn(x).

    The Pallas fast path is only taken when the caller explicitly flags the fn
    as elementwise (each output element depends only on the matching input
    element).  Everything else runs as plain JAX so position-dependent fns
    (softmax, per-channel norms, flips, reshapes, ...) stay correct.
    """

    def __init__(self, fn, elementwise=False):
        self.fn = fn
        self.elementwise = elementwise

    def __call__(self, x):
        if not self.elementwise:
            # TODO(synk): non-elementwise fns have no generic Pallas kernel.
            return self.fn(x)
        probe = jax.eval_shape(self.fn, jax.ShapeDtypeStruct(x.shape, x.dtype))
        if probe.shape != x.shape:
            return self.fn(x)
        # NOTE: inside a real model a standalone elementwise kernel forces one
        # full HBM read + write that XLA producer/consumer fusion could remove;
        # prefer the plain-JAX path there and keep this kernel for un-fusible
        # call sites.
        return _pallas_elementwise(self.fn, x, probe.dtype)


if __name__ == "__main__":
    key = jax.random.PRNGKey(0)

    # Concrete fn for the Lambda wrapper: SiLU, fn(x) = x * sigmoid(x).
    fn = lambda t: t * jax.nn.sigmoid(t)
    module = Lambda(fn, elementwise=True)
    forward = jax.jit(module.__call__)

    # Lane-aligned NCHW input: batch=2, channels=4, 16x16 -> 2048 elements.
    x = jax.random.normal(key, (2, 4, 16, 16), dtype=jnp.float32)
    y = jax.block_until_ready(forward(x))
    y_ref = fn(x)
    assert y.shape == x.shape and y.dtype == y_ref.dtype
    assert jnp.max(jnp.abs(y - y_ref)) < 1e-5

    # Ragged element count (3*5*7*11 = 1155): exercises the pad/slice fallback.
    x2 = jax.random.normal(key, (3, 5, 7, 11), dtype=jnp.float32)
    y2 = jax.block_until_ready(forward(x2))
    y2_ref = fn(x2)
    assert y2.shape == x2.shape
    assert jnp.max(jnp.abs(y2 - y2_ref)) < 1e-5

    print("KERNEL_OK")
</pallas_src>

<mosaic_0001>
module attributes {stable_mosaic.version = 11 : i64} {
  func.func @kernel(%arg0: i32, %arg1: memref<2x1024xf32, #tpu.memory_space<vmem>>, %arg2: memref<2x1024xf32, #tpu.memory_space<vmem>>) attributes {dimension_semantics = [#tpu.dimension_semantics<parallel>], iteration_bounds = array<i64: 1>, scalar_prefetch = 0 : i64, scratch_operands = 0 : i64, tpu.core_type = #tpu.core_type<tc>, window_params = [{transform_indices = @transform_0, window_bounds = array<i64: 2, 1024>}, {transform_indices = @transform_1, window_bounds = array<i64: 2, 1024>}]} {
    %c0 = arith.constant 0 : index
    %c0_0 = arith.constant 0 : index
    %0 = vector.load %arg1[%c0, %c0_0] : memref<2x1024xf32, #tpu.memory_space<vmem>>, vector<2x1024xf32>
    %1 = arith.negf %0 : vector<2x1024xf32>
    %2 = math.exp %1 : vector<2x1024xf32>
    %cst = arith.constant 1.000000e+00 : f32
    %3 = vector.broadcast %cst : f32 to vector<2x1024xf32>
    %4 = arith.addf %3, %2 : vector<2x1024xf32>
    %5 = arith.divf %3, %4 : vector<2x1024xf32>
    %6 = arith.mulf %0, %5 : vector<2x1024xf32>
    %c0_1 = arith.constant 0 : index
    %c0_2 = arith.constant 0 : index
    %7 = vector.load %arg2[%c0_1, %c0_2] : memref<2x1024xf32, #tpu.memory_space<vmem>>, vector<2x1024xf32>
    tpu.vector_store %arg2[%c0_1, %c0_2], %6 {strides = array<i32>} : memref<2x1024xf32, #tpu.memory_space<vmem>>, vector<2x1024xf32>,
    return
  }
  func.func @transform_0(%arg0: i32) -> (i32, i32) {
    %c0_i32 = arith.constant 0 : i32
    %c0_i32_0 = arith.constant 0 : i32
    return %arg0, %c0_i32 : i32, i32
  }
  func.func @transform_1(%arg0: i32) -> (i32, i32) {
    %c0_i32 = arith.constant 0 : i32
    %c0_i32_0 = arith.constant 0 : i32
    return %arg0, %c0_i32 : i32, i32
  }
}

</mosaic_0001>

<bundles_post_ra>
// kernel: a_call__.1
= control target key start
LH: loop header
LB: loop body
LE: loop exit
PB: predicated region body
PF: predicated region fallthrough
CT: control target
= control target key end

     0   :  { %s62_s0 = inlined_call_operand.vmem [shape: f32[2,1024], index: 0, kind: input, shape index: {}]   ;;  %s63_s1 = inlined_call_operand.vmem [shape: f32[2,1024], index: 1, kind: output, shape index: {}]  }
   0x1   :  { %v8_v0 = vld [vmem:[%s62_s0] sm:$0xff]  ;;  %v9_v1 = vld [vmem:[%s62_s0 + $0x8] sm:$0xff] }
   0x2   :  { %v30_v2 = vmul.f32 -1.442695, %v8_v0  ;;  %v31_v3 = vmul.f32 -1.442695, %v9_v1 }
   0x4   :  { %32 = vpow2.f32 %v30_v2 }
   0x5   :  { %34 = vpow2.f32 %v31_v3 }
   0xe   :  { %v33_v4 = vpop.eup %32 }
   0xf   :  { %v35_v5 = vpop.eup %34  ;;  %v16_v6 = vadd.f32 1.0, %v33_v4 }
  0x10   :  { %v17_v7 = vadd.f32 1.0, %v35_v5 }
  0x11   :  { %36 = vrcp.f32 %v16_v6 }
  0x12   :  { %38 = vrcp.f32 %v17_v7 }
  0x1b   :  { %v37_v8 = vpop.eup %36 }
  0x1c   :  { %v39_v9 = vpop.eup %38  ;;  %v22_v10 = vmul.f32 %v37_v8, %v8_v0 }
  0x1d   :  { %v23_v11 = vmul.f32 %v39_v9, %v9_v1 }
  0x1e   :  { %24 = vst [vmem:[%s63_s1] sm:$0xff] %v22_v10 }
  0x1f   :  { %25 = vst [vmem:[%s63_s1 + $0x8] sm:$0xff] %v23_v11 }

</bundles_post_ra>
